<compile_context>
chip_gen: v5e
topology: v5e:2x2
jax: 0.10.0
libtpu: 0.0.40
codegen_flags: <defaults>
</compile_context>

<pallas_src>
import functools
import math

import jax
import jax.numpy as jnp
from jax.experimental import pallas as pl
from jax.experimental.pallas import tpu as pltpu

MXU_DTYPE = jnp.bfloat16            # matmul operand / HBM-intermediate dtype
APPROX_SOFTMAX_RECIP = True

_VMEM_LIMIT = None


def _round_up(x, m):
    return ((x + m - 1) // m) * m


def _vmem_limit_bytes():
    global _VMEM_LIMIT
    if _VMEM_LIMIT is None:
        cap = 64 * 1024 * 1024                       # safe fallback (v7x)
        try:
            info = pltpu.get_tpu_info()
            cap = int(getattr(info, "vmem_capacity_bytes", cap))
        except Exception:
            pass
        _VMEM_LIMIT = min((cap * 3) // 4, 96 * 1024 * 1024)
    return _VMEM_LIMIT


def _cparams(semantics):
    return pltpu.CompilerParams(dimension_semantics=semantics,
                                vmem_limit_bytes=_vmem_limit_bytes())


def _softmax_lastaxis_over_knn(a):
    """softmax over axis=1 (the K axis) of a (rows, K, C) block."""
    m = jnp.max(a, axis=1, keepdims=True)
    e = jnp.exp(a - m)
    s = jnp.sum(e, axis=1, keepdims=True)
    if APPROX_SOFTMAX_RECIP:
        return e * pl.reciprocal(s, approx=True)
    return e / s


# ----------------------------------------------------------------------------
# Stage 1: fused mlp_v + all 1x1 projections + residual projection
# ----------------------------------------------------------------------------
def _stage1_kernel(pos_ref, key_ref, query_ref, upf_ref,
                   w1k_ref, w1q_ref, b1_ref, w2_ref, b2_ref,
                   wsck_ref, wscq_ref, bsc_ref,
                   wk_ref, bk_ref, wq_ref, bq_ref,
                   wv_ref, bv_ref, wu_ref, bu_ref,
                   *rest, has_residual):
    if has_residual:
        wres_ref, bres_ref, table_ref, qrow_ref, ident_ref = rest
    else:
        table_ref, qrow_ref, ident_ref = rest
    f32 = jnp.float32

    k = key_ref[...].astype(MXU_DTYPE)
    q = query_ref[...].astype(MXU_DTYPE)
    u = upf_ref[...].astype(MXU_DTYPE)

    # MLP_Res: value = conv2(relu(conv1(cat(k,q)))) + conv_shortcut(cat(k,q))
    h = (jnp.dot(k, w1k_ref[...], preferred_element_type=f32)
         + jnp.dot(q, w1q_ref[...], preferred_element_type=f32) + b1_ref[...])
    h = jnp.maximum(h, 0.0).astype(MXU_DTYPE)
    val = jnp.dot(h, w2_ref[...], preferred_element_type=f32) + b2_ref[...]
    val = val + (jnp.dot(k, wsck_ref[...], preferred_element_type=f32)
                 + jnp.dot(q, wscq_ref[...], preferred_element_type=f32)
                 + bsc_ref[...])
    valb = val.astype(MXU_DTYPE)

    key_f = jnp.dot(k, wk_ref[...], preferred_element_type=f32) + bk_ref[...]
    query_f = jnp.dot(q, wq_ref[...], preferred_element_type=f32) + bq_ref[...]
    value_f = jnp.dot(valb, wv_ref[...], preferred_element_type=f32) + bv_ref[...]
    upf_f = jnp.dot(u, wu_ref[...], preferred_element_type=f32) + bu_ref[...]

    dim = key_f.shape[-1]
    td = table_ref.dtype
    table_ref[:, 0:dim] = key_f.astype(td)
    table_ref[:, dim:2 * dim] = upf_f.astype(td)
    table_ref[:, 2 * dim:3 * dim] = value_f.astype(td)
    table_ref[:, 3 * dim:3 * dim + 3] = pos_ref[...].astype(td)
    qrow_ref[...] = query_f.astype(qrow_ref.dtype)

    if has_residual:
        ident_ref[...] = (jnp.dot(valb, wres_ref[...],
                                  preferred_element_type=f32) + bres_ref[...])
    else:
        ident_ref[...] = val


def _stage1(p, pos_cl, key_cl, query_cl, upfeat_cl, tile_m=1024):
    """Returns (table (B,N,3*dim+3) bf16, qrow (B,N,dim) bf16, ident (B,N,out) f32)."""
    B, N, in_ch = key_cl.shape
    dim = p['conv_key'][0].shape[1]
    has_res = 'residual' in p
    out_ch = p['residual'][0].shape[1] if has_res else in_ch
    M = B * N
    tm = min(_round_up(M, 8), tile_m)
    Ct = 3 * dim + 3

    bf = lambda w: w.astype(MXU_DTYPE)
    (w1, b1), (w2, b2), (wsc, bsc) = (p['mlp_v']['w1'], p['mlp_v']['w2'],
                                      p['mlp_v']['wsc'])
    args = [pos_cl.reshape(M, 3), key_cl.reshape(M, in_ch),
            query_cl.reshape(M, in_ch), upfeat_cl.reshape(M, in_ch),
            bf(w1[:in_ch]), bf(w1[in_ch:]), b1.reshape(1, -1),
            bf(w2), b2.reshape(1, -1),
            bf(wsc[:in_ch]), bf(wsc[in_ch:]), bsc.reshape(1, -1),
            bf(p['conv_key'][0]), p['conv_key'][1].reshape(1, -1),
            bf(p['conv_query'][0]), p['conv_query'][1].reshape(1, -1),
            bf(p['conv_value'][0]), p['conv_value'][1].reshape(1, -1),
            bf(p['conv_upfeat'][0]), p['conv_upfeat'][1].reshape(1, -1)]
    if has_res:
        args += [bf(p['residual'][0]), p['residual'][1].reshape(1, -1)]

    in_specs = [pl.BlockSpec((tm, 3), lambda i: (i, 0)),
                pl.BlockSpec((tm, in_ch), lambda i: (i, 0)),
                pl.BlockSpec((tm, in_ch), lambda i: (i, 0)),
                pl.BlockSpec((tm, in_ch), lambda i: (i, 0))]
    in_specs += [pl.BlockSpec(a.shape, lambda i: (0, 0)) for a in args[4:]]

    out_shapes = (jax.ShapeDtypeStruct((M, Ct), MXU_DTYPE),
                  jax.ShapeDtypeStruct((M, dim), MXU_DTYPE),
                  jax.ShapeDtypeStruct((M, out_ch), jnp.float32))
    out_specs = (pl.BlockSpec((tm, Ct), lambda i: (i, 0)),
                 pl.BlockSpec((tm, dim), lambda i: (i, 0)),
                 pl.BlockSpec((tm, out_ch), lambda i: (i, 0)))

    table, qrow, ident = pl.pallas_call(
        functools.partial(_stage1_kernel, has_residual=has_res),
        out_shape=out_shapes,
        grid=(pl.cdiv(M, tm),),
        in_specs=in_specs,
        out_specs=out_specs,
        compiler_params=_cparams(("parallel",)),
    )(*args)
    return (table.reshape(B, N, Ct), qrow.reshape(B, N, dim),
            ident.reshape(B, N, out_ch))


# ----------------------------------------------------------------------------
# Pairwise squared distances (row + column tiled, VPU K=3 contraction)
# ----------------------------------------------------------------------------
def _sqdist_kernel(t_ref, s_ref, o_ref):
    t = t_ref[0]                                    # (tm, 3)
    s = s_ref[0]                                    # (3, tc)
    acc = t[:, 0:1] * s[0:1, :]
    acc = acc + t[:, 1:2] * s[1:2, :]
    acc = acc + t[:, 2:3] * s[2:3, :]
    tn2 = jnp.sum(t * t, axis=1, keepdims=True)
    sn2 = jnp.sum(s * s, axis=0, keepdims=True)
    o_ref[0] = jnp.maximum(tn2 + sn2 - 2.0 * acc, 0.0)


def pairwise_sqdist(target_bnc, source_bcm, tile_rows=512, tile_cols=2048):
    """target (B,Nt,3), source (B,3,Ns) -> (B,Nt,Ns) squared distances."""
    B, Nt, _ = target_bnc.shape
    _, _, Ns = source_bcm.shape
    tm = min(_round_up(Nt, 8), tile_rows)
    if Ns <= tile_cols:
        tc = Ns
    elif Ns % tile_cols == 0:
        tc = tile_cols
    elif Ns % 1024 == 0:
        tc = 1024
    else:
        tc = Ns
    return pl.pallas_call(
        _sqdist_kernel,
        out_shape=jax.ShapeDtypeStruct((B, Nt, Ns), jnp.float32),
        grid=(B, pl.cdiv(Nt, tm), pl.cdiv(Ns, tc)),
        in_specs=[pl.BlockSpec((1, tm, 3), lambda b, i, j: (b, i, 0)),
                  pl.BlockSpec((1, 3, tc), lambda b, i, j: (b, 0, j))],
        out_specs=pl.BlockSpec((1, tm, tc), lambda b, i, j: (b, i, j)),
        compiler_params=_cparams(("parallel", "parallel", "parallel")),
    )(target_bnc, source_bcm)


# ----------------------------------------------------------------------------
# Stage 2: fused neighborhood kernel
#   qk_rel / pos_rel / pos_mlp / upfeat_rel / attn_mlp / ConvTranspose taps /
#   per-tap softmax + weighted sum / conv_end / upsampled residual add
# ----------------------------------------------------------------------------
def _neigh_kernel(g_ref, row_ref, q_ref, id_ref,
                  pw1_ref, pb1_ref, pw2_ref, pb2_ref,
                  aw1_ref, ab1_ref, awt_ref, abt_ref,
                  we_ref, be_ref, o_ref, *, up):
    f32 = jnp.float32
    g = g_ref[0]                                     # (tn, K, Ct) bf16
    tn, K, _ = g.shape
    dim = q_ref.shape[-1]
    row = row_ref[0]                                 # (tn, Ct) bf16
    q = q_ref[0].astype(f32)                         # (tn, dim)

    key_n = g[:, :, 0:dim].astype(f32)               # neighbor projections
    upf_n = g[:, :, dim:2 * dim].astype(f32)
    val_n = g[:, :, 2 * dim:3 * dim].astype(f32)
    pos_n = g[:, :, 3 * dim:3 * dim + 3].astype(f32)
    upf_c = row[:, dim:2 * dim].astype(f32)          # center rows
    pos_c = row[:, 3 * dim:3 * dim + 3].astype(f32)

    qk_rel = q[:, None, :] - key_n                   # (tn, K, dim)
    pos_rel = pos_c[:, None, :] - pos_n              # (tn, K, 3)
    upf_rel = upf_c[:, None, :] - upf_n              # (tn, K, dim)

    # pos_mlp layer 1 (Cin=3): VPU broadcast-MAC, folded BN + ReLU
    w1 = pw1_ref[...]                                # (3, ph) f32
    pe = (pos_rel[:, :, 0:1] * w1[0:1, :]
          + pos_rel[:, :, 1:2] * w1[1:2, :]
          + pos_rel[:, :, 2:3] * w1[2:3, :]) + pb1_ref[...]
    pe = jnp.maximum(pe, 0.0)                        # (tn, K, ph)
    ph = pe.shape[-1]
    pos_emb = (jnp.dot(pe.astype(MXU_DTYPE).reshape(tn * K, ph), pw2_ref[...],
                       preferred_element_type=f32)
               + pb2_ref[...]).reshape(tn, K, dim)

    attn_in = (qk_rel + pos_emb + upf_rel).astype(MXU_DTYPE).reshape(tn * K, dim)
    h = jnp.maximum(jnp.dot(attn_in, aw1_ref[...], preferred_element_type=f32)
                    + ab1_ref[...], 0.0)
    y = (jnp.dot(h.astype(MXU_DTYPE), awt_ref[...], preferred_element_type=f32)
         + abt_ref[...])                             # (tn*K, up*ao)
    ao = y.shape[-1] // up

    v = val_n + pos_emb + upf_rel                    # (tn, K, dim)

    aggs = []
    for t in range(up):                              # static unroll over taps
        a = y[:, t * ao:(t + 1) * ao].reshape(tn, K, ao)
        p = _softmax_lastaxis_over_knn(a)
        aggs.append(jnp.sum(p * v, axis=1))          # (tn, dim)
    agg = jnp.stack(aggs, axis=1).reshape(tn * up, dim)   # row order: i*up + t

    end = (jnp.dot(agg.astype(MXU_DTYPE), we_ref[...],
                   preferred_element_type=f32) + be_ref[...])  # (tn*up, out)
    idn = id_ref[0]                                  # (tn, out) f32
    out_ch = idn.shape[-1]
    out = end.reshape(tn, up, out_ch) + idn[:, None, :]       # nearest upsample
    o_ref[0] = out.reshape(tn * up, out_ch)


def _stage2(p, gathered, table, qrow, ident, up, tile_n=128):
    B, N, K, Ct = gathered.shape
    dim = qrow.shape[-1]
    out_ch = ident.shape[-1]
    tn = min(_round_up(N, 8), tile_n)
    bf = lambda w: w.astype(MXU_DTYPE)

    pw1, pb1 = p['pos_mlp1']
    pw2, pb2 = p['pos_mlp2']
    aw1, ab1 = p['attn_mlp1']
    awt, abt = p['attn_convT'] if 'attn_convT' in p else p['attn_mlp2']
    we, be = p['conv_end']
    assert awt.shape[1] % up == 0

    args = [gathered, table, qrow, ident,
            pw1.astype(jnp.float32), pb1.reshape(1, -1),
            bf(pw2), pb2.reshape(1, -1),
            bf(aw1), ab1.reshape(1, -1),
            bf(awt), abt.reshape(1, -1),
            bf(we), be.reshape(1, -1)]
    in_specs = [pl.BlockSpec((1, tn, K, Ct), lambda b, i: (b, i, 0, 0)),
                pl.BlockSpec((1, tn, Ct), lambda b, i: (b, i, 0)),
                pl.BlockSpec((1, tn, dim), lambda b, i: (b, i, 0)),
                pl.BlockSpec((1, tn, out_ch), lambda b, i: (b, i, 0))]
    in_specs += [pl.BlockSpec(a.shape, lambda b, i: (0, 0)) for a in args[4:]]

    return pl.pallas_call(
        functools.partial(_neigh_kernel, up=up),
        out_shape=jax.ShapeDtypeStruct((B, up * N, out_ch), jnp.float32),
        grid=(B, pl.cdiv(N, tn)),
        in_specs=in_specs,
        out_specs=pl.BlockSpec((1, tn * up, out_ch), lambda b, i: (b, i, 0)),
        compiler_params=_cparams(("parallel", "parallel")),
    )(*args)


# ----------------------------------------------------------------------------
# UpTransformer forward (use_upfeat=True, attn_channel=True, Softmax scale)
# ----------------------------------------------------------------------------
def up_transformer(p, pos, key, query, upfeat, *, up_factor, n_knn):
    """pos (B,3,N), key/query/upfeat (B,C,N) -> (B, out_ch, up*N)."""
    B, _, N = pos.shape
    up = up_factor if up_factor else 1

    # enter channels-last exactly once
    pos_cl = jnp.transpose(pos, (0, 2, 1))                    # (B, N, 3)
    key_cl = jnp.transpose(key, (0, 2, 1))
    query_cl = key_cl if (query is key) else jnp.transpose(query, (0, 2, 1))
    upfeat_cl = jnp.transpose(upfeat, (0, 2, 1))

    # stage 1: mlp_v + conv_key/query/value/upfeat + residual proj (one kernel)
    table, qrow, ident = _stage1(p, pos_cl, key_cl, query_cl, upfeat_cl)

    # KNN on positions (query_knn, include_self=True)
    d = pairwise_sqdist(pos_cl, pos)                          # (B, N, N)
    _, idx_knn = jax.lax.top_k(-d, n_knn)                     # (B, N, K)
    # TODO(synk): fuse a blocked running top-k into the distance kernel and
    #             gather the point table in-kernel to drop these HBM trips.
    gathered = jax.vmap(lambda t, i: t[i])(table, idx_knn)    # (B, N, K, Ct) bf16

    # stage 2: entire neighborhood chain + conv_end + upsampled residual
    out_cl = _stage2(p, gathered, table, qrow, ident, up=up)  # (B, up*N, out)
    return jnp.transpose(out_cl, (0, 2, 1))                   # (B, out, up*N)


# ----------------------------------------------------------------------------
# Deterministic parameter initialization (shapes from the module __init__)
# ----------------------------------------------------------------------------
class KeyGen:
    def __init__(self, seed):
        self._key = jax.random.PRNGKey(seed)

    def __call__(self):
        self._key, sub = jax.random.split(self._key)
        return sub


def init_conv(kg, cin, cout, scale=1.0):
    bound = 1.0 / math.sqrt(cin)
    w = jax.random.uniform(kg(), (cin, cout), jnp.float32, -bound, bound) * scale
    b = jax.random.uniform(kg(), (cout,), jnp.float32, -bound, bound) * scale
    return w, b


def init_mlp_res(kg, in_dim, hidden, out_dim):
    return {'w1': init_conv(kg, in_dim, hidden),
            'w2': init_conv(kg, hidden, out_dim),
            'wsc': init_conv(kg, in_dim, out_dim)}


def init_uptrans(seed, in_ch, out_ch, dim=64, up_factor=2,
                 pos_hidden=64, attn_mult=4, attn_channel=True):
    kg = KeyGen(seed)
    bn = 1.0 / math.sqrt(1.0 + 1e-5)      # eval-mode BN folded into conv
    attn_out = dim if attn_channel else 1
    hid = dim * attn_mult
    p = {
        'mlp_v': init_mlp_res(kg, in_ch * 2, in_ch, in_ch),
        'conv_key': init_conv(kg, in_ch, dim),
        'conv_query': init_conv(kg, in_ch, dim),
        'conv_value': init_conv(kg, in_ch, dim),
        'conv_upfeat': init_conv(kg, in_ch, dim),
        'pos_mlp1': init_conv(kg, 3, pos_hidden, scale=bn),
        'pos_mlp2': init_conv(kg, pos_hidden, dim),
        'attn_mlp1': init_conv(kg, dim, hid, scale=bn),
        'conv_end': init_conv(kg, dim, out_ch),
    }
    if up_factor:
        bound = 1.0 / math.sqrt(hid)
        taps = [jax.random.uniform(kg(), (hid, attn_out), jnp.float32,
                                   -bound, bound) for _ in range(up_factor)]
        tb = jax.random.uniform(kg(), (attn_out,), jnp.float32, -bound, bound)
        p['attn_convT'] = (jnp.concatenate(taps, axis=1), jnp.tile(tb, up_factor))
    else:
        p['attn_mlp2'] = init_conv(kg, hid, attn_out)
    if in_ch != out_ch:
        p['residual'] = init_conv(kg, in_ch, out_ch)
    return p


# ----------------------------------------------------------------------------
if __name__ == "__main__":
    B, N, C, dim, n_knn, up_factor = 2, 16, 32, 32, 8, 2

    params_up = init_uptrans(0, C, C, dim=dim, up_factor=up_factor)
    params_id = init_uptrans(1, C, C, dim=dim, up_factor=None)

    key0 = jax.random.PRNGKey(0)
    k1, k2, k3 = jax.random.split(key0, 3)
    pos = jax.random.normal(k1, (B, 3, N), jnp.float32)
    feat = jax.random.normal(k2, (B, C, N), jnp.float32)       # key == query
    upfeat = jax.random.normal(k3, (B, C, N), jnp.float32)

    out_up = up_transformer(params_up, pos, feat, feat, upfeat,
                            up_factor=up_factor, n_knn=n_knn)
    out_id = up_transformer(params_id, pos, feat, feat, upfeat,
                            up_factor=None, n_knn=n_knn)
    jax.block_until_ready((out_up, out_id))

    assert out_up.shape == (B, C, N * up_factor)
    assert out_id.shape == (B, C, N)
    assert bool(jnp.all(jnp.isfinite(out_up)))
    assert bool(jnp.all(jnp.isfinite(out_id)))
    print("KERNEL_OK")
</pallas_src>

<mosaic_0001>
module attributes {stable_mosaic.version = 11 : i64} {
  func.func @_stage1_kernel(%arg0: i32, %arg1: memref<32x3xf32, #tpu.memory_space<vmem>>, %arg2: memref<32x32xf32, #tpu.memory_space<vmem>>, %arg3: memref<32x32xf32, #tpu.memory_space<vmem>>, %arg4: memref<32x32xf32, #tpu.memory_space<vmem>>, %arg5: memref<32x32xbf16, #tpu.memory_space<vmem>>, %arg6: memref<32x32xbf16, #tpu.memory_space<vmem>>, %arg7: memref<1x32xf32, #tpu.memory_space<vmem>>, %arg8: memref<32x32xbf16, #tpu.memory_space<vmem>>, %arg9: memref<1x32xf32, #tpu.memory_space<vmem>>, %arg10: memref<32x32xbf16, #tpu.memory_space<vmem>>, %arg11: memref<32x32xbf16, #tpu.memory_space<vmem>>, %arg12: memref<1x32xf32, #tpu.memory_space<vmem>>, %arg13: memref<32x32xbf16, #tpu.memory_space<vmem>>, %arg14: memref<1x32xf32, #tpu.memory_space<vmem>>, %arg15: memref<32x32xbf16, #tpu.memory_space<vmem>>, %arg16: memref<1x32xf32, #tpu.memory_space<vmem>>, %arg17: memref<32x32xbf16, #tpu.memory_space<vmem>>, %arg18: memref<1x32xf32, #tpu.memory_space<vmem>>, %arg19: memref<32x32xbf16, #tpu.memory_space<vmem>>, %arg20: memref<1x32xf32, #tpu.memory_space<vmem>>, %arg21: memref<32x99xbf16, #tpu.memory_space<vmem>>, %arg22: memref<32x32xbf16, #tpu.memory_space<vmem>>, %arg23: memref<32x32xf32, #tpu.memory_space<vmem>>) attributes {dimension_semantics = [#tpu.dimension_semantics<parallel>], iteration_bounds = array<i64: 1>, scalar_prefetch = 0 : i64, scratch_operands = 0 : i64, tpu.core_type = #tpu.core_type<tc>, window_params = [{transform_indices = @transform_0, window_bounds = array<i64: 32, 3>}, {transform_indices = @transform_1, window_bounds = array<i64: 32, 32>}, {transform_indices = @transform_2, window_bounds = array<i64: 32, 32>}, {transform_indices = @transform_3, window_bounds = array<i64: 32, 32>}, {pipeline_mode = #tpu.pipeline_mode<synchronous>, transform_indices = @transform_4, window_bounds = array<i64: 32, 32>}, {pipeline_mode = #tpu.pipeline_mode<synchronous>, transform_indices = @transform_5, window_bounds = array<i64: 32, 32>}, {pipeline_mode = #tpu.pipeline_mode<synchronous>, transform_indices = @transform_6, window_bounds = array<i64: 1, 32>}, {pipeline_mode = #tpu.pipeline_mode<synchronous>, transform_indices = @transform_7, window_bounds = array<i64: 32, 32>}, {pipeline_mode = #tpu.pipeline_mode<synchronous>, transform_indices = @transform_8, window_bounds = array<i64: 1, 32>}, {pipeline_mode = #tpu.pipeline_mode<synchronous>, transform_indices = @transform_9, window_bounds = array<i64: 32, 32>}, {pipeline_mode = #tpu.pipeline_mode<synchronous>, transform_indices = @transform_10, window_bounds = array<i64: 32, 32>}, {pipeline_mode = #tpu.pipeline_mode<synchronous>, transform_indices = @transform_11, window_bounds = array<i64: 1, 32>}, {pipeline_mode = #tpu.pipeline_mode<synchronous>, transform_indices = @transform_12, window_bounds = array<i64: 32, 32>}, {pipeline_mode = #tpu.pipeline_mode<synchronous>, transform_indices = @transform_13, window_bounds = array<i64: 1, 32>}, {pipeline_mode = #tpu.pipeline_mode<synchronous>, transform_indices = @transform_14, window_bounds = array<i64: 32, 32>}, {pipeline_mode = #tpu.pipeline_mode<synchronous>, transform_indices = @transform_15, window_bounds = array<i64: 1, 32>}, {pipeline_mode = #tpu.pipeline_mode<synchronous>, transform_indices = @transform_16, window_bounds = array<i64: 32, 32>}, {pipeline_mode = #tpu.pipeline_mode<synchronous>, transform_indices = @transform_17, window_bounds = array<i64: 1, 32>}, {pipeline_mode = #tpu.pipeline_mode<synchronous>, transform_indices = @transform_18, window_bounds = array<i64: 32, 32>}, {pipeline_mode = #tpu.pipeline_mode<synchronous>, transform_indices = @transform_19, window_bounds = array<i64: 1, 32>}, {transform_indices = @transform_20, window_bounds = array<i64: 32, 99>}, {transform_indices = @transform_21, window_bounds = array<i64: 32, 32>}, {transform_indices = @transform_22, window_bounds = array<i64: 32, 32>}]} {
    %c0 = arith.constant 0 : index
    %c0_0 = arith.constant 0 : index
    %0 = vector.load %arg2[%c0, %c0_0] : memref<32x32xf32, #tpu.memory_space<vmem>>, vector<32x32xf32>
    %1 = arith.truncf %0 : vector<32x32xf32> to vector<32x32xbf16>
    %c0_1 = arith.constant 0 : index
    %c0_2 = arith.constant 0 : index
    %2 = vector.load %arg3[%c0_1, %c0_2] : memref<32x32xf32, #tpu.memory_space<vmem>>, vector<32x32xf32>
    %3 = arith.truncf %2 : vector<32x32xf32> to vector<32x32xbf16>
    %c0_3 = arith.constant 0 : index
    %c0_4 = arith.constant 0 : index
    %4 = vector.load %arg4[%c0_3, %c0_4] : memref<32x32xf32, #tpu.memory_space<vmem>>, vector<32x32xf32>
    %5 = arith.truncf %4 : vector<32x32xf32> to vector<32x32xbf16>
    %c0_5 = arith.constant 0 : index
    %c0_6 = arith.constant 0 : index
    %6 = vector.load %arg5[%c0_5, %c0_6] : memref<32x32xbf16, #tpu.memory_space<vmem>>, vector<32x32xbf16>
    %cst = arith.constant dense<0.000000e+00> : vector<32x32xf32>
    %7 = tpu.matmul %1, %6, %cst {dimension_numbers = #tpu.dot_dimension_numbers<[1], [0], [0], [1], [0, 0, 1, 1], [], []>} : vector<32x32xbf16>, vector<32x32xbf16>, vector<32x32xf32> -> vector<32x32xf32>
    %c0_7 = arith.constant 0 : index
    %c0_8 = arith.constant 0 : index
    %8 = vector.load %arg6[%c0_7, %c0_8] : memref<32x32xbf16, #tpu.memory_space<vmem>>, vector<32x32xbf16>
    %cst_9 = arith.constant dense<0.000000e+00> : vector<32x32xf32>
    %9 = tpu.matmul %3, %8, %cst_9 {dimension_numbers = #tpu.dot_dimension_numbers<[1], [0], [0], [1], [0, 0, 1, 1], [], []>} : vector<32x32xbf16>, vector<32x32xbf16>, vector<32x32xf32> -> vector<32x32xf32>
    %10 = arith.addf %7, %9 : vector<32x32xf32>
    %c0_10 = arith.constant 0 : index
    %c0_11 = arith.constant 0 : index
    %11 = vector.load %arg7[%c0_10, %c0_11] : memref<1x32xf32, #tpu.memory_space<vmem>>, vector<1x32xf32>
    %12 = vector.broadcast %11 : vector<1x32xf32> to vector<32x32xf32>
    %13 = arith.addf %10, %12 : vector<32x32xf32>
    %cst_12 = arith.constant 0.000000e+00 : f32
    %14 = vector.broadcast %cst_12 : f32 to vector<32x32xf32>
    %15 = arith.maximumf %13, %14 : vector<32x32xf32>
    %16 = arith.truncf %15 : vector<32x32xf32> to vector<32x32xbf16>
    %c0_13 = arith.constant 0 : index
    %c0_14 = arith.constant 0 : index
    %17 = vector.load %arg8[%c0_13, %c0_14] : memref<32x32xbf16, #tpu.memory_space<vmem>>, vector<32x32xbf16>
    %cst_15 = arith.constant dense<0.000000e+00> : vector<32x32xf32>
    %18 = tpu.matmul %16, %17, %cst_15 {dimension_numbers = #tpu.dot_dimension_numbers<[1], [0], [0], [1], [0, 0, 1, 1], [], []>} : vector<32x32xbf16>, vector<32x32xbf16>, vector<32x32xf32> -> vector<32x32xf32>
    %c0_16 = arith.constant 0 : index
    %c0_17 = arith.constant 0 : index
    %19 = vector.load %arg9[%c0_16, %c0_17] : memref<1x32xf32, #tpu.memory_space<vmem>>, vector<1x32xf32>
    %20 = vector.broadcast %19 : vector<1x32xf32> to vector<32x32xf32>
    %21 = arith.addf %18, %20 : vector<32x32xf32>
    %c0_18 = arith.constant 0 : index
    %c0_19 = arith.constant 0 : index
    %22 = vector.load %arg10[%c0_18, %c0_19] : memref<32x32xbf16, #tpu.memory_space<vmem>>, vector<32x32xbf16>
    %cst_20 = arith.constant dense<0.000000e+00> : vector<32x32xf32>
    %23 = tpu.matmul %1, %22, %cst_20 {dimension_numbers = #tpu.dot_dimension_numbers<[1], [0], [0], [1], [0, 0, 1, 1], [], []>} : vector<32x32xbf16>, vector<32x32xbf16>, vector<32x32xf32> -> vector<32x32xf32>
    %c0_21 = arith.constant 0 : index
    %c0_22 = arith.constant 0 : index
    %24 = vector.load %arg11[%c0_21, %c0_22] : memref<32x32xbf16, #tpu.memory_space<vmem>>, vector<32x32xbf16>
    %cst_23 = arith.constant dense<0.000000e+00> : vector<32x32xf32>
    %25 = tpu.matmul %3, %24, %cst_23 {dimension_numbers = #tpu.dot_dimension_numbers<[1], [0], [0], [1], [0, 0, 1, 1], [], []>} : vector<32x32xbf16>, vector<32x32xbf16>, vector<32x32xf32> -> vector<32x32xf32>
    %26 = arith.addf %23, %25 : vector<32x32xf32>
    %c0_24 = arith.constant 0 : index
    %c0_25 = arith.constant 0 : index
    %27 = vector.load %arg12[%c0_24, %c0_25] : memref<1x32xf32, #tpu.memory_space<vmem>>, vector<1x32xf32>
    %28 = vector.broadcast %27 : vector<1x32xf32> to vector<32x32xf32>
    %29 = arith.addf %26, %28 : vector<32x32xf32>
    %30 = arith.addf %21, %29 : vector<32x32xf32>
    %31 = arith.truncf %30 : vector<32x32xf32> to vector<32x32xbf16>
    %c0_26 = arith.constant 0 : index
    %c0_27 = arith.constant 0 : index
    %32 = vector.load %arg13[%c0_26, %c0_27] : memref<32x32xbf16, #tpu.memory_space<vmem>>, vector<32x32xbf16>
    %cst_28 = arith.constant dense<0.000000e+00> : vector<32x32xf32>
    %33 = tpu.matmul %1, %32, %cst_28 {dimension_numbers = #tpu.dot_dimension_numbers<[1], [0], [0], [1], [0, 0, 1, 1], [], []>} : vector<32x32xbf16>, vector<32x32xbf16>, vector<32x32xf32> -> vector<32x32xf32>
    %c0_29 = arith.constant 0 : index
    %c0_30 = arith.constant 0 : index
    %34 = vector.load %arg14[%c0_29, %c0_30] : memref<1x32xf32, #tpu.memory_space<vmem>>, vector<1x32xf32>
    %35 = vector.broadcast %34 : vector<1x32xf32> to vector<32x32xf32>
    %36 = arith.addf %33, %35 : vector<32x32xf32>
    %c0_31 = arith.constant 0 : index
    %c0_32 = arith.constant 0 : index
    %37 = vector.load %arg15[%c0_31, %c0_32] : memref<32x32xbf16, #tpu.memory_space<vmem>>, vector<32x32xbf16>
    %cst_33 = arith.constant dense<0.000000e+00> : vector<32x32xf32>
    %38 = tpu.matmul %3, %37, %cst_33 {dimension_numbers = #tpu.dot_dimension_numbers<[1], [0], [0], [1], [0, 0, 1, 1], [], []>} : vector<32x32xbf16>, vector<32x32xbf16>, vector<32x32xf32> -> vector<32x32xf32>
    %c0_34 = arith.constant 0 : index
    %c0_35 = arith.constant 0 : index
    %39 = vector.load %arg16[%c0_34, %c0_35] : memref<1x32xf32, #tpu.memory_space<vmem>>, vector<1x32xf32>
    %40 = vector.broadcast %39 : vector<1x32xf32> to vector<32x32xf32>
    %41 = arith.addf %38, %40 : vector<32x32xf32>
    %c0_36 = arith.constant 0 : index
    %c0_37 = arith.constant 0 : index
    %42 = vector.load %arg17[%c0_36, %c0_37] : memref<32x32xbf16, #tpu.memory_space<vmem>>, vector<32x32xbf16>
    %cst_38 = arith.constant dense<0.000000e+00> : vector<32x32xf32>
    %43 = tpu.matmul %31, %42, %cst_38 {dimension_numbers = #tpu.dot_dimension_numbers<[1], [0], [0], [1], [0, 0, 1, 1], [], []>} : vector<32x32xbf16>, vector<32x32xbf16>, vector<32x32xf32> -> vector<32x32xf32>
    %c0_39 = arith.constant 0 : index
    %c0_40 = arith.constant 0 : index
    %44 = vector.load %arg18[%c0_39, %c0_40] : memref<1x32xf32, #tpu.memory_space<vmem>>, vector<1x32xf32>
    %45 = vector.broadcast %44 : vector<1x32xf32> to vector<32x32xf32>
    %46 = arith.addf %43, %45 : vector<32x32xf32>
    %c0_41 = arith.constant 0 : index
    %c0_42 = arith.constant 0 : index
    %47 = vector.load %arg19[%c0_41, %c0_42] : memref<32x32xbf16, #tpu.memory_space<vmem>>, vector<32x32xbf16>
    %cst_43 = arith.constant dense<0.000000e+00> : vector<32x32xf32>
    %48 = tpu.matmul %5, %47, %cst_43 {dimension_numbers = #tpu.dot_dimension_numbers<[1], [0], [0], [1], [0, 0, 1, 1], [], []>} : vector<32x32xbf16>, vector<32x32xbf16>, vector<32x32xf32> -> vector<32x32xf32>
    %c0_44 = arith.constant 0 : index
    %c0_45 = arith.constant 0 : index
    %49 = vector.load %arg20[%c0_44, %c0_45] : memref<1x32xf32, #tpu.memory_space<vmem>>, vector<1x32xf32>
    %50 = vector.broadcast %49 : vector<1x32xf32> to vector<32x32xf32>
    %51 = arith.addf %48, %50 : vector<32x32xf32>
    %52 = arith.truncf %36 : vector<32x32xf32> to vector<32x32xbf16>
    %c0_46 = arith.constant 0 : index
    %c0_47 = arith.constant 0 : index
    %53 = vector.load %arg21[%c0_46, %c0_47] : memref<32x99xbf16, #tpu.memory_space<vmem>>, vector<32x32xbf16>
    tpu.vector_store %arg21[%c0_46, %c0_47], %52 {strides = array<i32>} : memref<32x99xbf16, #tpu.memory_space<vmem>>, vector<32x32xbf16>,
    %54 = arith.truncf %51 : vector<32x32xf32> to vector<32x32xbf16>
    %c0_48 = arith.constant 0 : index
    %c32 = arith.constant 32 : index
    %55 = vector.load %arg21[%c0_48, %c32] : memref<32x99xbf16, #tpu.memory_space<vmem>>, vector<32x32xbf16>
    tpu.vector_store %arg21[%c0_48, %c32], %54 {strides = array<i32>} : memref<32x99xbf16, #tpu.memory_space<vmem>>, vector<32x32xbf16>,
    %56 = arith.truncf %46 : vector<32x32xf32> to vector<32x32xbf16>
    %c0_49 = arith.constant 0 : index
    %c64 = arith.constant 64 : index
    %57 = vector.load %arg21[%c0_49, %c64] : memref<32x99xbf16, #tpu.memory_space<vmem>>, vector<32x32xbf16>
    tpu.vector_store %arg21[%c0_49, %c64], %56 {strides = array<i32>} : memref<32x99xbf16, #tpu.memory_space<vmem>>, vector<32x32xbf16>,
    %c0_50 = arith.constant 0 : index
    %c0_51 = arith.constant 0 : index
    %58 = vector.load %arg1[%c0_50, %c0_51] : memref<32x3xf32, #tpu.memory_space<vmem>>, vector<32x3xf32>
    %59 = arith.truncf %58 : vector<32x3xf32> to vector<32x3xbf16>
    %c0_52 = arith.constant 0 : index
    %c96 = arith.constant 96 : index
    %60 = vector.load %arg21[%c0_52, %c96] : memref<32x99xbf16, #tpu.memory_space<vmem>>, vector<32x3xbf16>
    tpu.vector_store %arg21[%c0_52, %c96], %59 {strides = array<i32>} : memref<32x99xbf16, #tpu.memory_space<vmem>>, vector<32x3xbf16>,
    %61 = arith.truncf %41 : vector<32x32xf32> to vector<32x32xbf16>
    %c0_53 = arith.constant 0 : index
    %c0_54 = arith.constant 0 : index
    %62 = vector.load %arg22[%c0_53, %c0_54] : memref<32x32xbf16, #tpu.memory_space<vmem>>, vector<32x32xbf16>
    tpu.vector_store %arg22[%c0_53, %c0_54], %61 {strides = array<i32>} : memref<32x32xbf16, #tpu.memory_space<vmem>>, vector<32x32xbf16>,
    %c0_55 = arith.constant 0 : index
    %c0_56 = arith.constant 0 : index
    %63 = vector.load %arg23[%c0_55, %c0_56] : memref<32x32xf32, #tpu.memory_space<vmem>>, vector<32x32xf32>
    tpu.vector_store %arg23[%c0_55, %c0_56], %30 {strides = array<i32>} : memref<32x32xf32, #tpu.memory_space<vmem>>, vector<32x32xf32>,
    return
  }
  func.func @transform_0(%arg0: i32) -> (i32, i32) {
    %c0_i32 = arith.constant 0 : i32
    %c0_i32_0 = arith.constant 0 : i32
    return %arg0, %c0_i32 : i32, i32
  }
  func.func @transform_1(%arg0: i32) -> (i32, i32) {
    %c0_i32 = arith.constant 0 : i32
    %c0_i32_0 = arith.constant 0 : i32
    return %arg0, %c0_i32 : i32, i32
  }
  func.func @transform_2(%arg0: i32) -> (i32, i32) {
    %c0_i32 = arith.constant 0 : i32
    %c0_i32_0 = arith.constant 0 : i32
    return %arg0, %c0_i32 : i32, i32
  }
  func.func @transform_3(%arg0: i32) -> (i32, i32) {
    %c0_i32 = arith.constant 0 : i32
    %c0_i32_0 = arith.constant 0 : i32
    return %arg0, %c0_i32 : i32, i32
  }
  func.func @transform_4(%arg0: i32) -> (i32, i32) {
    %c0_i32 = arith.constant 0 : i32
    %c0_i32_0 = arith.constant 0 : i32
    %c0_i32_1 = arith.constant 0 : i32
    return %c0_i32, %c0_i32_0 : i32, i32
  }
  func.func @transform_5(%arg0: i32) -> (i32, i32) {
    %c0_i32 = arith.constant 0 : i32
    %c0_i32_0 = arith.constant 0 : i32
    %c0_i32_1 = arith.constant 0 : i32
    return %c0_i32, %c0_i32_0 : i32, i32
  }
  func.func @transform_6(%arg0: i32) -> (i32, i32) {
    %c0_i32 = arith.constant 0 : i32
    %c0_i32_0 = arith.constant 0 : i32
    %c0_i32_1 = arith.constant 0 : i32
    return %c0_i32, %c0_i32_0 : i32, i32
  }
  func.func @transform_7(%arg0: i32) -> (i32, i32) {
    %c0_i32 = arith.constant 0 : i32
    %c0_i32_0 = arith.constant 0 : i32
    %c0_i32_1 = arith.constant 0 : i32
    return %c0_i32, %c0_i32_0 : i32, i32
  }
  func.func @transform_8(%arg0: i32) -> (i32, i32) {
    %c0_i32 = arith.constant 0 : i32
    %c0_i32_0 = arith.constant 0 : i32
    %c0_i32_1 = arith.constant 0 : i32
    return %c0_i32, %c0_i32_0 : i32, i32
  }
  func.func @transform_9(%arg0: i32) -> (i32, i32) {
    %c0_i32 = arith.constant 0 : i32
    %c0_i32_0 = arith.constant 0 : i32
    %c0_i32_1 = arith.constant 0 : i32
    return %c0_i32, %c0_i32_0 : i32, i32
  }
  func.func @transform_10(%arg0: i32) -> (i32, i32) {
    %c0_i32 = arith.constant 0 : i32
    %c0_i32_0 = arith.constant 0 : i32
    %c0_i32_1 = arith.constant 0 : i32
    return %c0_i32, %c0_i32_0 : i32, i32
  }
  func.func @transform_11(%arg0: i32) -> (i32, i32) {
    %c0_i32 = arith.constant 0 : i32
    %c0_i32_0 = arith.constant 0 : i32
    %c0_i32_1 = arith.constant 0 : i32
    return %c0_i32, %c0_i32_0 : i32, i32
  }
  func.func @transform_12(%arg0: i32) -> (i32, i32) {
    %c0_i32 = arith.constant 0 : i32
    %c0_i32_0 = arith.constant 0 : i32
    %c0_i32_1 = arith.constant 0 : i32
    return %c0_i32, %c0_i32_0 : i32, i32
  }
  func.func @transform_13(%arg0: i32) -> (i32, i32) {
    %c0_i32 = arith.constant 0 : i32
    %c0_i32_0 = arith.constant 0 : i32
    %c0_i32_1 = arith.constant 0 : i32
    return %c0_i32, %c0_i32_0 : i32, i32
  }
  func.func @transform_14(%arg0: i32) -> (i32, i32) {
    %c0_i32 = arith.constant 0 : i32
    %c0_i32_0 = arith.constant 0 : i32
    %c0_i32_1 = arith.constant 0 : i32
    return %c0_i32, %c0_i32_0 : i32, i32
  }
  func.func @transform_15(%arg0: i32) -> (i32, i32) {
    %c0_i32 = arith.constant 0 : i32
    %c0_i32_0 = arith.constant 0 : i32
    %c0_i32_1 = arith.constant 0 : i32
    return %c0_i32, %c0_i32_0 : i32, i32
  }
  func.func @transform_16(%arg0: i32) -> (i32, i32) {
    %c0_i32 = arith.constant 0 : i32
    %c0_i32_0 = arith.constant 0 : i32
    %c0_i32_1 = arith.constant 0 : i32
    return %c0_i32, %c0_i32_0 : i32, i32
  }
  func.func @transform_17(%arg0: i32) -> (i32, i32) {
    %c0_i32 = arith.constant 0 : i32
    %c0_i32_0 = arith.constant 0 : i32
    %c0_i32_1 = arith.constant 0 : i32
    return %c0_i32, %c0_i32_0 : i32, i32
  }
  func.func @transform_18(%arg0: i32) -> (i32, i32) {
    %c0_i32 = arith.constant 0 : i32
    %c0_i32_0 = arith.constant 0 : i32
    %c0_i32_1 = arith.constant 0 : i32
    return %c0_i32, %c0_i32_0 : i32, i32
  }
  func.func @transform_19(%arg0: i32) -> (i32, i32) {
    %c0_i32 = arith.constant 0 : i32
    %c0_i32_0 = arith.constant 0 : i32
    %c0_i32_1 = arith.constant 0 : i32
    return %c0_i32, %c0_i32_0 : i32, i32
  }
  func.func @transform_20(%arg0: i32) -> (i32, i32) {
    %c0_i32 = arith.constant 0 : i32
    %c0_i32_0 = arith.constant 0 : i32
    return %arg0, %c0_i32 : i32, i32
  }
  func.func @transform_21(%arg0: i32) -> (i32, i32) {
    %c0_i32 = arith.constant 0 : i32
    %c0_i32_0 = arith.constant 0 : i32
    return %arg0, %c0_i32 : i32, i32
  }
  func.func @transform_22(%arg0: i32) -> (i32, i32) {
    %c0_i32 = arith.constant 0 : i32
    %c0_i32_0 = arith.constant 0 : i32
    return %arg0, %c0_i32 : i32, i32
  }
}

</mosaic_0001>

<bundles_post_ra>
// kernel: tpu_custom_call.1
= control target key start
LH: loop header
LB: loop body
LE: loop exit
PB: predicated region body
PF: predicated region fallthrough
CT: control target
= control target key end

     0   :  { %s1759_s0 = inlined_call_operand.vmem [shape: f32[32,3], index: 0, kind: input, shape index: {}]   ;;  %s1760_s1 = inlined_call_operand.vmem [shape: f32[32,32], index: 1, kind: input, shape index: {}]   ;;  %s1761_s2 = inlined_call_operand.hbm [shape: f32[32,32], index: 2, kind: input, shape index: {}]   ;;  %s1762_s3 = inlined_call_operand.hbm [shape: f32[32,32], index: 3, kind: input, shape index: {}]   ;;  %s1763_s4 = inlined_call_operand.hbm [shape: bf16[32,32], index: 4, kind: input, shape index: {}]   ;;  %s1764_s5 = inlined_call_operand.hbm [shape: bf16[32,32], index: 5, kind: input, shape index: {}]   ;;  %s1765_s6 = inlined_call_operand.hbm [shape: f32[1,32], index: 6, kind: input, shape index: {}]   ;;  %s1766_s7 = inlined_call_operand.hbm [shape: bf16[32,32], index: 7, kind: input, shape index: {}]   ;;  %s1767_s8 = inlined_call_operand.hbm [shape: f32[1,32], index: 8, kind: input, shape index: {}]   ;;  %s1768_s9 = inlined_call_operand.hbm [shape: bf16[32,32], index: 9, kind: input, shape index: {}]   ;;  %s1769_s10 = inlined_call_operand.hbm [shape: bf16[32,32], index: 10, kind: input, shape index: {}]   ;;  %s1770_s11 = inlined_call_operand.hbm [shape: f32[1,32], index: 11, kind: input, shape index: {}]   ;;  %s1771_s12 = inlined_call_operand.hbm [shape: bf16[32,32], index: 12, kind: input, shape index: {}]   ;;  %s1772_s13 = inlined_call_operand.hbm [shape: f32[1,32], index: 13, kind: input, shape index: {}]   ;;  %s1773_s14 = inlined_call_operand.vmem [shape: bf16[32,32], index: 14, kind: input, shape index: {}]   ;;  %s1774_s15 = inlined_call_operand.vmem [shape: f32[1,32], index: 15, kind: input, shape index: {}]   ;;  %s1775_s16 = inlined_call_operand.hbm [shape: bf16[32,32], index: 16, kind: input, shape index: {}]   ;;  %s1776_s17 = inlined_call_operand.vmem [shape: f32[1,32], index: 17, kind: input, shape index: {}]   ;;  %s1777_s18 = inlined_call_operand.hbm [shape: bf16[32,32], index: 18, kind: input, shape index: {}]   ;;  %s1778_s19 = inlined_call_operand.vmem [shape: f32[1,32], index: 19, kind: input, shape index: {}]   ;;  %s1779_s20 = inlined_call_operand.hbm [shape: bf16[32,99], index: 20, kind: output, shape index: {0}]   ;;  %s1780_s21 = inlined_call_operand.hbm [shape: bf16[32,32], index: 21, kind: output, shape index: {1}]   ;;  %s1781_s22 = inlined_call_operand.hbm [shape: f32[32,32], index: 22, kind: output, shape index: {2}]  }
   0x1   :  { %1788 = sst [smem:[#allocation39_spill]] %s1759_s0 }
   0x2   :  { %1789 = sst [smem:[#allocation40_spill]] %s1760_s1 }
   0x3   :  { %1790 = sst [smem:[#allocation41_spill]] %s1761_s2 }
   0x4   :  { %1791 = sst [smem:[#allocation42_spill]] %s1762_s3 }
   0x5   :  { %1792 = sst [smem:[#allocation43_spill]] %s1763_s4 }
   0x6   :  { %1793 = sst [smem:[#allocation44_spill]] %s1764_s5 }
   0x7   :  { %1794 = sst [smem:[#allocation45_spill]] %s1765_s6 }
   0x8   :  { %28 = vsyncpa [#allocation3], 0 }
   0x9   :  { %29 = vsyncpa [#allocation6], 0 }
   0xa   :  { %30 = vsyncpa [#allocation9], 0 }
   0xb   :  { %31 = vsyncpa [#allocation12], 0 }
   0xc   :  { %32 = vsyncpa [#allocation15], 0 }
   0xd   :  { %33 = vsyncpa [#allocation18], 0 }
   0xe   :  { %34 = vsyncpa [#allocation21], 0 }
   0xf   :  { %35 = vsyncpa [#allocation24], 0 }
  0x10   :  { %36 = vsyncpa [#allocation4], 0 }
  0x11   :  { %37 = vsyncpa [#allocation27], 0  ;;  %s1795_s29 = sld [smem:[#allocation42_spill]]  ;;  %s1422_s4 = smov [#allocation5]  }
  0x12   :  { %s61_s0 = sshll.u32 %s1422_s4, 4  ;;  %s1784_s23 = smov 128   ;;  %s62_s0 = int_to_ptr.vmem [resolvable:$true] %s61_s0 }
  0x13   :  { %s1424_s1 = smov 8   ;;  %s1796_s6 = sld [smem:[#allocation44_spill]] }
  0x14   :  { %s1425_s26 = smov [#allocation8]   ;;  %s109_s28 = sshll.u32 %s1766_s7, 4  ;;  %s110_s28 = int_to_ptr.hbm [resolvable:$true] %s109_s28 }
  0x15   :  { %s87_s2 = sshll.u32 %s1425_s26, 4  ;;  %s1427_s4 = smov 4   ;;  %s88_s2 = int_to_ptr.vmem [resolvable:$true] %s87_s2 }
  0x16   :  { %s133_s5 = sshll.u32 %s1768_s9, 4  ;;  %s1428_s24 = smov [#allocation11]   ;;  %s134_s5 = int_to_ptr.hbm [resolvable:$true] %s133_s5 }
  0x17   :  { %s59_s30 = sshll.u32 %s1795_s29, 4  ;;  %s1786_s29 = smov 64   ;;  %s60_s30 = int_to_ptr.hbm [resolvable:$true] %s59_s30 }
  0x18   :  { %67 = dma.hbm_to_vmem [thread:$0]  %s60_s30, 512, %s62_s0, [#allocation6], %s1784_s23, %s1784_s23, %s1424_s1  }
  0x19   :  { %s85_s25 = sshll.u32 %s1796_s6, 4  ;;  %s111_s6 = sshll.u32 %s1428_s24, 4  ;;  %s86_s25 = int_to_ptr.hbm [resolvable:$true] %s85_s25  ;;  %s112_s6 = int_to_ptr.vmem [resolvable:$true] %s111_s6 }
  0x1a   :  { %93 = dma.hbm_to_vmem [thread:$0]  %s86_s25, 256, %s88_s2, [#allocation9], %s1786_s29, %s1786_s29, %s1427_s4  }
  0x1b   :  { %117 = dma.hbm_to_vmem [thread:$0]  %s110_s28, 256, %s112_s6, [#allocation12], %s1786_s29, %s1786_s29, %s1427_s4  }
  0x1c   :  { %s1429_s7 = smov [#allocation14]   ;;  %s160_s23 = sshll.u32 %s1770_s11, 4  ;;  %s161_s23 = int_to_ptr.hbm [resolvable:$true] %s160_s23 }
  0x1d   :  { %s135_s26 = sshll.u32 %s1429_s7, 4  ;;  %s184_s2 = sshll.u32 %s1772_s13, 4  ;;  %s136_s26 = int_to_ptr.vmem [resolvable:$true] %s135_s26  ;;  %s185_s2 = int_to_ptr.hbm [resolvable:$true] %s184_s2 }
  0x1e   :  { %141 = dma.hbm_to_vmem [thread:$0]  %s134_s5, 256, %s136_s26, [#allocation15], %s1786_s29, %s1786_s29, %s1427_s4  }
  0x1f   :  { %s1430_s30 = smov [#allocation17]   ;;  %s1431_s28 = smov [#allocation20]  }
  0x20   :  { %s162_s0 = sshll.u32 %s1430_s30, 4  ;;  %s186_s24 = sshll.u32 %s1431_s28, 4  ;;  %s163_s0 = int_to_ptr.vmem [resolvable:$true] %s162_s0  ;;  %s187_s24 = int_to_ptr.vmem [resolvable:$true] %s186_s24 }
  0x21   :  { %165 = dma.hbm_to_vmem [thread:$0]  %s161_s23, 16, %s163_s0, [#allocation18]  }
  0x22   :  { %s1797_s11 = sld [smem:[#allocation41_spill]]  ;;  %s1432_s9 = smov [#allocation2]  }
  0x23   :  { %189 = dma.hbm_to_vmem [thread:$0]  %s185_s2, 16, %s187_s24, [#allocation21]  }
  0x24   :  { %s1798_s26 = sld [smem:[#allocation43_spill]]  ;;  %s48_s13 = sshll.u32 %s1432_s9, 4  ;;  %s49_s13 = int_to_ptr.vmem [resolvable:$true] %s48_s13 }
  0x25   :  { %s1799_s25 = smov 128   ;;  %s1433_s23 = smov [#allocation7]  }
  0x26   :  { %s74_s30 = sshll.u32 %s1433_s23, 4  ;;  %s1800_s6 = sld [smem:[#allocation45_spill]]  ;;  %s75_s30 = int_to_ptr.vmem [resolvable:$true] %s74_s30 }
  0x27   :  { %s1801_s2 = smov 64   ;;  %s123_s3 = sshll.u32 %s1767_s8, 4  ;;  %s124_s3 = int_to_ptr.hbm [resolvable:$true] %s123_s3 }
  0x28   :  { %s46_s27 = sshll.u32 %s1797_s11, 4  ;;  %s1434_s5 = smov [#allocation10]   ;;  %s47_s27 = int_to_ptr.hbm [resolvable:$true] %s46_s27 }
  0x29   :  { %54 = dma.hbm_to_vmem [thread:$0]  %s47_s27, 512, %s49_s13, [#allocation3], %s1799_s25, %s1799_s25, %s1424_s1  }
  0x2a   :  { %s72_s29 = sshll.u32 %s1798_s26, 4  ;;  %s101_s26 = sshll.u32 %s1434_s5, 4  ;;  %s73_s29 = int_to_ptr.hbm [resolvable:$true] %s72_s29  ;;  %s102_s26 = int_to_ptr.vmem [resolvable:$true] %s101_s26 }
  0x2b   :  { %80 = dma.hbm_to_vmem [thread:$0]  %s73_s29, 256, %s75_s30, [#allocation6], %s1801_s2, %s1801_s2, %s1427_s4  }
  0x2c   :  { %s99_s7 = sshll.u32 %s1800_s6, 4  ;;  %s1435_s27 = smov [#allocation13]   ;;  %s100_s7 = int_to_ptr.hbm [resolvable:$true] %s99_s7 }
  0x2d   :  { %104 = dma.hbm_to_vmem [thread:$0]  %s100_s7, 16, %s102_s26, [#allocation9]  }
  0x2e   :  { %s125_s9 = sshll.u32 %s1435_s27, 4  ;;  %s146_s0 = sshll.u32 %s1769_s10, 4  ;;  %s126_s9 = int_to_ptr.vmem [resolvable:$true] %s125_s9  ;;  %s147_s0 = int_to_ptr.hbm [resolvable:$true] %s146_s0 }
  0x2f   :  { %128 = dma.hbm_to_vmem [thread:$0]  %s124_s3, 16, %s126_s9, [#allocation12]  }
  0x30   :  { %s170_s30 = sshll.u32 %s1771_s12, 4  ;;  %s1436_s6 = smov [#allocation16]   ;;  %s171_s30 = int_to_ptr.hbm [resolvable:$true] %s170_s30 }
  0x31   :  { %s148_s8 = sshll.u32 %s1436_s6, 4  ;;  %s1437_s7 = smov [#allocation19]   ;;  %s149_s8 = int_to_ptr.vmem [resolvable:$true] %s148_s8 }
  0x32   :  { %154 = dma.hbm_to_vmem [thread:$0]  %s147_s0, 256, %s149_s8, [#allocation15], %s1801_s2, %s1801_s2, %s1427_s4  }
  0x33   :  { %s172_s24 = sshll.u32 %s1437_s7, 4  ;;  %s198_s10 = sshll.u32 %s1775_s16, 4  ;;  %s173_s24 = int_to_ptr.vmem [resolvable:$true] %s172_s24  ;;  %s199_s10 = int_to_ptr.hbm [resolvable:$true] %s198_s10 }
  0x34   :  { %178 = dma.hbm_to_vmem [thread:$0]  %s171_s30, 256, %s173_s24, [#allocation18], %s1801_s2, %s1801_s2, %s1427_s4  }
  0x35   :  { %s213_s26 = sshll.u32 %s1777_s18, 4  ;;  %s1438_s27 = smov [#allocation22]   ;;  %s214_s26 = int_to_ptr.hbm [resolvable:$true] %s213_s26 }
  0x36   :  { %s200_s9 = sshll.u32 %s1438_s27, 4  ;;  %s1439_s13 = smov [#allocation23]   ;;  %s201_s9 = int_to_ptr.vmem [resolvable:$true] %s200_s9 }
  0x37   :  { %206 = dma.hbm_to_vmem [thread:$0]  %s199_s10, 256, %s201_s9, [#allocation21], %s1801_s2, %s1801_s2, %s1427_s4  }
  0x38   :  { %s215_s16 = sshll.u32 %s1439_s13, 4  ;;  %s216_s16 = int_to_ptr.vmem [resolvable:$true] %s215_s16 }
  0x39   :  { %221 = dma.hbm_to_vmem [thread:$0]  %s214_s26, 256, %s216_s16, [#allocation24], %s1801_s2, %s1801_s2, %s1427_s4  }
  0x3a   :  { %1402 = dma.done.wait [#allocation3], 512  }
  0x3b   :  { %1403 = vsyncadd [#allocation3], 4294966784 }
  0x3c   :  { %1404 = dma.done.wait [#allocation6], 768  }
  0x3d   :  { %1405 = vsyncadd [#allocation6], 4294966528 }
  0x3e   :  { %1406 = dma.done.wait [#allocation9], 272  }
  0x3f   :  { %1407 = vsyncadd [#allocation9], 4294967024 }
  0x40   :  { %1408 = dma.done.wait [#allocation12], 272  }
  0x41   :  { %1409 = vsyncadd [#allocation12], 4294967024 }
  0x42   :  { %1410 = dma.done.wait [#allocation15], 512  }
  0x43   :  { %1411 = vsyncadd [#allocation15], 4294966784 }
  0x44   :  { %1412 = dma.done.wait [#allocation18], 272  }
  0x45   :  { %1413 = vsyncadd [#allocation18], 4294967024 }
  0x46   :  { %1414 = dma.done.wait [#allocation21], 272  }
  0x47   :  { %1415 = vsyncadd [#allocation21], 4294967024 }
  0x48   :  { %1416 = dma.done.wait [#allocation24], 256  }
  0x49   :  { %1417 = vsyncadd [#allocation24], 4294967040  ;;  %v947_v0 = vld [vmem:[#allocation8 + $0x8] sm:$0xff]  ;;  %v946_v1 = vld [vmem:[#allocation8] sm:$0xff]  ;;  %vm319_vm0 = vcmask 261120   ;;  %s1802_s0 = sld [smem:[#allocation40_spill]] }
  0x4a   :  { %v289_v2 = vld [vmem:[#allocation2 + $0x10] sm:$0xff]  ;;  %962 = vmatpush.bf16.msra.mxu1 %v947_v0  ;;  %v290_v3 = vld [vmem:[#allocation2 + $0x18] sm:$0xff]  ;;  %332 = vmatpush.bf16.msra.mxu0 %v947_v0  ;;  %v287_v4 = vld [vmem:[#allocation2] sm:$0xff]  ;;  %s1803_s3 = sld [smem:[#allocation39_spill]]  ;;  %s1440_s26 = smov 96   ;;  %vm697_vm1 = vcmask 257024  }
  0x4b   :  { %v288_v5 = vld [vmem:[#allocation2 + $0x8] sm:$0xff]  ;;  %v1632_v7 = vpack.c.bf16 %v290_v3, %v289_v2  ;;  %v944_v9 = vld [vmem:[#allocation7] sm:$0xff]  ;;  %v950_v20 = vld [vmem:[#allocation14] sm:$0xff]  ;;  %s1441_s13 = smov 32   ;;  %vm722_vm2 = vcmask 519424   ;;  %vm747_vm3 = vcmask 781824  }
  0x4c   :  { %v945_v6 = vld [vmem:[#allocation7 + $0x8] sm:$0xff]  ;;  %v1634_v8 = vpack.c.bf16 %v288_v5, %v287_v4  ;;  %v951_v18 = vld [vmem:[#allocation14 + $0x8] sm:$0xff]  ;;  %v959_v27 = vld [vmem:[#allocation22 + $0x8] sm:$0xff]  ;;  %vm776_vm4 = vcmask 806656   ;;  %s812_s11 = sshll.u32 %s1780_s21, 4  ;;  %s1443_s5 = smov [#allocation28]   ;;  %s813_s11 = int_to_ptr.hbm [resolvable:$true] %s812_s11 }
  0x4d   :  { %v953_v16 = vld [vmem:[#allocation16 + $0x8] sm:$0xff]  ;;  %v952_v17 = vld [vmem:[#allocation16] sm:$0xff]  ;;  %v987_v29 = vld [vmem:[#allocation10] ss:$0 sm:$0xff]  ;;  %s823_s10 = sshll.u32 %s1443_s5, 4  ;;  %s1444_s21 = smov [#allocation25]   ;;  %s824_s10 = int_to_ptr.vmem [resolvable:$true] %s823_s10 }
  0x4e   :  { %963 = vmatpush.bf16.msra.mxu1 %v946_v1  ;;  %333 = vmatpush.bf16.msra.mxu0 %v946_v1  ;;  %v949_v19 = vld [vmem:[#allocation11 + $0x8] sm:$0xff]  ;;  %v948_v21 = vld [vmem:[#allocation11] sm:$0xff]  ;;  %v960_v47 = vld [vmem:[#allocation23] sm:$0xff]  ;;  %s799_s9 = sshll.u32 %s1779_s20, 4  ;;  %s800_s9 = int_to_ptr.hbm [resolvable:$true] %s799_s9 }
  0x4f   :  { %v281_v10 = vld [vmem:[%s1802_s0] sm:$0xff]  ;;  %v282_v11 = vld [vmem:[%s1802_s0 + $0x8] sm:$0xff]  ;;  %v283_v13 = vld [vmem:[%s1802_s0 + $0x10] sm:$0xff]  ;;  %467 = vmatpush.bf16.msra.mxu3 %v953_v16  ;;  %428 = vmatpush.bf16.msra.mxu2 %v949_v19 }
  0x50   :  { %v1646_v12 = vpack.c.bf16 %v282_v11, %v281_v10  ;;  %v284_v14 = vld [vmem:[%s1802_s0 + $0x18] sm:$0xff]  ;;  %v961_v26 = vld [vmem:[#allocation23 + $0x8] sm:$0xff]  ;;  %v294_v49 = vld [vmem:[#allocation5 + $0x8] sm:$0xff] }
  0x51   :  { %863 = vmatmul.msk.bf16.vlgmr.msra.gmra.mxu1 %vm319_vm0, %v1632_v7  ;;  %862 = vmatmul.msk.bf16.vlgmr.msra.gmra.mxu0 %vm319_vm0, %v1634_v8  ;;  %v1656_v15 = vpack.c.bf16 %v284_v14, %v283_v13  ;;  %v293_v48 = vld [vmem:[#allocation5] sm:$0xff]  ;;  %v958_v51 = vld [vmem:[#allocation22] sm:$0xff]  ;;  %v295_v52 = vld [vmem:[#allocation5 + $0x10] sm:$0xff] }
  0x52   :  { %369 = vmatpush.bf16.msrb.mxu1 %v945_v6  ;;  %498 = vmatpush.bf16.msrb.mxu0 %v951_v18  ;;  %v297_v50 = vpack.c.bf16 %v294_v49, %v293_v48  ;;  %v296_v53 = vld [vmem:[#allocation5 + $0x18] sm:$0xff]  ;;  %v988_v58 = vld [vmem:[#allocation17] ss:$0 sm:$0xff]  ;;  %v989_v60 = vld [vmem:[#allocation13] ss:$0 sm:$0xff] }
  0x53   :  { %468 = vmatpush.bf16.msra.mxu3 %v952_v17  ;;  %429 = vmatpush.bf16.msra.mxu2 %v948_v21  ;;  %v298_v55 = vpack.c.bf16 %v296_v53, %v295_v52  ;;  %v955_v63 = vld [vmem:[#allocation19 + $0x8] sm:$0xff]  ;;  %v957_v0 = vld [vmem:[%s1773_s14 + $0x8] sm:$0xff]  ;;  %v954_v3 = vld [vmem:[#allocation19] sm:$0xff] }
  0x54   :  { %v956_v4 = vld [vmem:[%s1773_s14] sm:$0xff]  ;;  %v755_v53 = vld [vmem:[%s1803_s3 + $0x18] sm:$0xff] }
  0x56   :  { %370 = vmatpush.bf16.msrb.mxu1 %v944_v9  ;;  %892 = vmatmul.msk.bf16.vlgmr.msra.gmra.mxu3 %vm319_vm0, %v1634_v8 }
  0x57   :  { %499 = vmatpush.bf16.msrb.mxu0 %v950_v20  ;;  %635 = vmatpush.bf16.msrb.mxu3 %v959_v27 }
  0x58   :  { %590 = vmatpush.bf16.msrb.mxu2 %v957_v0 }
  0x5a   :  { %551 = vmatpush.bf16.msra.mxu1 %v955_v63  ;;  %v754_v63 = vld [vmem:[%s1803_s3 + $0x10] sm:$0xff] }
  0x5b   :  { %680 = vmatpush.bf16.msra.mxu0 %v961_v26  ;;  %636 = vmatpush.bf16.msrb.mxu3 %v958_v51 }
  0x5c   :  { %591 = vmatpush.bf16.msrb.mxu2 %v956_v4 }
  0x5e   :  { %552 = vmatpush.bf16.msra.mxu1 %v954_v3 }
  0x5f   :  { %681 = vmatpush.bf16.msra.mxu0 %v960_v47 }
  0x61   :  { %872 = vmatmul.msk.bf16.vlgmr.msrb.gmra.mxu1 %vm319_vm0, %v1646_v12  ;;  %902 = vmatmul.msk.bf16.vlgmr.msrb.gmra.mxu0 %vm319_vm0, %v1646_v12 }
  0x66   :  { %893 = vmatmul.msk.bf16.gmra.mxu3 %vm319_vm0, %v1632_v7 }
  0x71   :  { %873 = vmatmul.msk.bf16.gmra.mxu1 %vm319_vm0, %v1656_v15  ;;  %903 = vmatmul.msk.bf16.gmra.mxu0 %vm319_vm0, %v1656_v15 }
  0x81   :  { %942 = vmatmul.msk.bf16.vlgmr.msra.gmra.mxu0 %vm319_vm0, %v297_v50  ;;  %912 = vmatmul.msk.bf16.vlgmr.msra.gmra.mxu1 %vm319_vm0, %v1646_v12 }
  0x91   :  { %943 = vmatmul.msk.bf16.gmra.mxu0 %vm319_vm0, %v298_v55  ;;  %913 = vmatmul.msk.bf16.gmra.mxu1 %vm319_vm0, %v1656_v15 }
  0xce   :  { %v340_v22 = vpop.f32.mrf.mxu1  ;;  %v335_v24 = vpop.f32.mrf.mxu0 }
  0xd6   :  { %v342_v23 = vpop.f32.mrf.mxu1  ;;  %v337_v30 = vpop.f32.mrf.mxu0 }
  0xd9   :  { %v470_v54 = vpop.f32.mrf.mxu3 }
  0xde   :  { %v372_v25 = vpop.f32.mrf.mxu1  ;;  %v501_v56 = vpop.f32.mrf.mxu0 }
  0xdf   :  { %v373_v28 = vadd.f32 %v372_v25, %v335_v24  ;;  %v502_v57 = vadd.f32 %v501_v56, %v470_v54  ;;  %v759_v56 = vpack.c.bf16 %v755_v53, %v755_v53 }
  0xe1   :  { %v386_v32 = vadd.f32 %v987_v29, %v373_v28  ;;  %v472_v59 = vpop.f32.mrf.mxu3  ;;  %v515_v62 = vadd.f32 %v988_v58, %v502_v57 }
  0xe3   :  { %v390_v35 = vmax.f32 %v386_v32, 0.0 }
  0xe6   :  { %v374_v31 = vpop.f32.mrf.mxu1  ;;  %v503_v61 = vpop.f32.mrf.mxu0 }
  0xe7   :  { %v375_v33 = vadd.f32 %v374_v31, %v337_v30  ;;  %v504_v6 = vadd.f32 %v503_v61, %v472_v59 }
  0xe9   :  { %v387_v34 = vadd.f32 %v987_v29, %v375_v33  ;;  %v475_v9 = vpop.f32.mrf.mxu3  ;;  %v516_v13 = vadd.f32 %v988_v58, %v504_v6  ;;  %v993_v6 = vld [vmem:[%s1774_s15] ss:$0 sm:$0xff]  ;;  %s1442_s15 = smov [#allocation26]  }
  0xea   :  { %s810_s8 = sshll.u32 %s1442_s15, 4  ;;  %s811_s8 = int_to_ptr.vmem [resolvable:$true] %s810_s8 }
  0xeb   :  { %v391_v36 = vmax.f32 %v387_v34, 0.0 }
  0xed   :  { %v394_v37 = vpack.c.bf16 %v391_v36, %v390_v35 }
  0xee   :  { %v377_v38 = vpop.f32.mrf.mxu1  ;;  %v506_v10 = vpop.f32.mrf.mxu0 }
  0xef   :  { %882 = vmatmul.msk.bf16.vlgmr.msra.gmra.mxu2 %vm319_vm0, %v394_v37  ;;  %v378_v39 = vadd.f32 %v377_v38, %v340_v22  ;;  %v507_v16 = vadd.f32 %v506_v10, %v475_v9 }
  0xf1   :  { %v388_v41 = vadd.f32 %v987_v29, %v378_v39  ;;  %v517_v19 = vadd.f32 %v988_v58, %v507_v16  ;;  %v477_v22 = vpop.f32.mrf.mxu3 }
  0xf3   :  { %v392_v44 = vmax.f32 %v388_v41, 0.0 }
  0xf6   :  { %v379_v40 = vpop.f32.mrf.mxu1 }
  0xf7   :  { %v380_v42 = vadd.f32 %v379_v40, %v342_v23  ;;  %v508_v23 = vpop.f32.mrf.mxu0 }
  0xf8   :  { %v509_v25 = vadd.f32 %v508_v23, %v477_v22 }
  0xf9   :  { %v389_v43 = vadd.f32 %v987_v29, %v380_v42  ;;  %v752_v29 = vld [vmem:[%s1803_s3] sm:$0xff] }
  0xfa   :  { %v756_v30 = vpack.c.bf16 %v752_v29, %v752_v29  ;;  %v991_v42 = vld [vmem:[%s1776_s17] ss:$0 sm:$0xff] }
  0xfb   :  { %v393_v45 = vmax.f32 %v389_v43, 0.0 }
  0xfc   :  { %764 = vrot.lane.b32.xlu2 %v756_v30, %s1440_s26 }
  0xfd   :  { %v395_v46 = vpack.c.bf16 %v393_v45, %v392_v44 }
  0xfe   :  { %v554_v47 = vpop.f32.mrf.mxu1 }
  0xff   :  { %883 = vmatmul.msk.bf16.gmra.mxu2 %vm319_vm0, %v395_v46  ;;  %v683_v15 = vpop.f32.mrf.mxu0  ;;  %v992_v46 = vld [vmem:[#allocation20] ss:$0 sm:$0xff] }
 0x100   :  { %v555_v48 = vadd.f32 %v992_v46, %v554_v47 }
 0x102   :  { %v693_v51 = vpack.c.bf16 %v555_v48, %v555_v48 }
 0x104   :  { %698 = vst.msk [vmem:[#allocation25] sm:$0xf] %vm697_vm1, %v693_v51 }
 0x107   :  { %v685_v33 = vpop.f32.mrf.mxu0 }
 0x10f   :  { %922 = vmatmul.msk.bf16.vlgmr.msrb.gmra.mxu2 %vm319_vm0, %v1634_v8  ;;  %v518_v8 = vadd.f32 %v988_v58, %v509_v25  ;;  %v688_v36 = vpop.f32.mrf.mxu0  ;;  %v753_v58 = vld [vmem:[%s1803_s3 + $0x8] sm:$0xff]  ;;  %s825_s3 = sshll.u32 %s1781_s22, 4  ;;  %s797_s22 = sshll.u32 %s1444_s21, 4  ;;  %s826_s3 = int_to_ptr.hbm [resolvable:$true] %s825_s3  ;;  %s798_s22 = int_to_ptr.vmem [resolvable:$true] %s797_s22 }
 0x110   :  { %v757_v61 = vpack.c.bf16 %v753_v58, %v753_v58 }
 0x117   :  { %v690_v39 = vpop.f32.mrf.mxu0 }
 0x11f   :  { %923 = vmatmul.msk.bf16.gmra.mxu2 %vm319_vm0, %v1632_v7  ;;  %v990_v7 = vld [vmem:[%s1778_s19] ss:$0 sm:$0xff] }
 0x120   :  { %v684_v31 = vadd.f32 %v990_v7, %v683_v15  ;;  %v686_v34 = vadd.f32 %v990_v7, %v685_v33  ;;  %v689_v37 = vadd.f32 %v990_v7, %v688_v36  ;;  %v691_v40 = vadd.f32 %v990_v7, %v690_v39 }
 0x122   :  { %v702_v32 = vpack.c.bf16 %v684_v31, %v684_v31  ;;  %v703_v35 = vpack.c.bf16 %v686_v34, %v686_v34  ;;  %v704_v38 = vpack.c.bf16 %v689_v37, %v689_v37  ;;  %v705_v41 = vpack.c.bf16 %v691_v40, %v691_v40 }
 0x124   :  { %710 = vrot.lane.b32.xlu0 %v702_v32, %s1441_s13  ;;  %714 = vrot.lane.b32.xlu1 %v704_v38, %s1441_s13 }
 0x12c   :  { %712 = vrot.lane.b32.xlu0 %v703_v35, %s1441_s13  ;;  %716 = vrot.lane.b32.xlu1 %v705_v41, %s1441_s13 }
 0x156   :  { %v765_v23 = vpop.permute.xlu2 %764 }
 0x172   :  { %v431_v1 = vpop.f32.mrf.mxu2 }
 0x173   :  { %v432_v2 = vadd.f32 %v989_v60, %v431_v1  ;;  %v758_v1 = vpack.c.bf16 %v754_v63, %v754_v63 }
 0x175   :  { %v519_v5 = vadd.f32 %v515_v62, %v432_v2  ;;  %v556_v2 = vpop.f32.mrf.mxu1 }
 0x176   :  { %v557_v3 = vadd.f32 %v992_v46, %v556_v2 }
 0x177   :  { %789 = vst.msk [vmem:[#allocation28] sm:$0xff] %vm319_vm0, %v519_v5 }
 0x178   :  { %v694_v4 = vpack.c.bf16 %v557_v3, %v557_v3 }
 0x17a   :  { %v433_v11 = vpop.f32.mrf.mxu2  ;;  %699 = vst.msk [vmem:[#allocation25 + $0x4] sm:$0xf] %vm697_vm1, %v694_v4 }
 0x17b   :  { %v434_v14 = vadd.f32 %v989_v60, %v433_v11 }
 0x17d   :  { %v520_v17 = vadd.f32 %v516_v13, %v434_v14  ;;  %v559_v10 = vpop.f32.mrf.mxu1 }
 0x17e   :  { %v560_v11 = vadd.f32 %v992_v46, %v559_v10 }
 0x17f   :  { %v523_v18 = vpack.c.bf16 %v520_v17, %v519_v5  ;;  %790 = vst.msk [vmem:[#allocation28 + $0x8] sm:$0xff] %vm319_vm0, %v520_v17 }
 0x180   :  { %v695_v14 = vpack.c.bf16 %v560_v11, %v560_v11 }
 0x181   :  { %932 = vmatmul.msk.bf16.vlgmr.msrb.gmra.mxu3 %vm319_vm0, %v523_v18 }
 0x182   :  { %v436_v20 = vpop.f32.mrf.mxu2  ;;  %700 = vst.msk [vmem:[#allocation25 + $0x8] sm:$0xf] %vm697_vm1, %v695_v14 }
 0x183   :  { %v437_v21 = vadd.f32 %v989_v60, %v436_v20 }
 0x185   :  { %v521_v24 = vadd.f32 %v517_v19, %v437_v21  ;;  %v561_v18 = vpop.f32.mrf.mxu1 }
 0x186   :  { %v562_v20 = vadd.f32 %v992_v46, %v561_v18 }
 0x187   :  { %791 = vst.msk [vmem:[#allocation28 + $0x10] sm:$0xff] %vm319_vm0, %v521_v24 }
 0x188   :  { %v696_v22 = vpack.c.bf16 %v562_v20, %v562_v20 }
 0x18a   :  { %v438_v12 = vpop.f32.mrf.mxu2  ;;  %701 = vst.msk [vmem:[#allocation25 + $0xc] sm:$0xf] %vm697_vm1, %v696_v22 }
 0x18b   :  { %v439_v26 = vadd.f32 %v989_v60, %v438_v12 }
 0x18d   :  { %v522_v27 = vadd.f32 %v518_v8, %v439_v26 }
 0x18f   :  { %792 = vst.msk [vmem:[#allocation28 + $0x18] sm:$0xff] %vm319_vm0, %v522_v27  ;;  %v524_v28 = vpack.c.bf16 %v522_v27, %v521_v24 }
 0x191   :  { %933 = vmatmul.msk.bf16.gmra.mxu3 %vm319_vm0, %v524_v28 }
 0x192   :  { %v593_v9 = vpop.f32.mrf.mxu2 }
 0x193   :  { %v594_v13 = vadd.f32 %v993_v6, %v593_v9 }
 0x195   :  { %v781_v16 = vpack.c.bf16 %v594_v13, %v594_v13 }
 0x196   :  { %v711_v0 = vpop.permute.xlu0 %710  ;;  %v715_v24 = vpop.permute.xlu1 %714 }
 0x197   :  { %723 = vst.msk [vmem:[#allocation25] sm:$0xf] %vm722_vm2, %v711_v0 }
 0x198   :  { %785 = vst.msk [vmem:[#allocation26] sm:$0xf] %vm697_vm1, %v781_v16 }
 0x199   :  { %725 = vst.msk [vmem:[#allocation25 + $0x8] sm:$0xf] %vm722_vm2, %v715_v24 }
 0x19a   :  { %v595_v17 = vpop.f32.mrf.mxu2 }
 0x19b   :  { %v596_v19 = vadd.f32 %v993_v6, %v595_v17 }
 0x19d   :  { %v782_v21 = vpack.c.bf16 %v596_v19, %v596_v19 }
 0x19e   :  { %v713_v5 = vpop.permute.xlu0 %712  ;;  %v717_v27 = vpop.permute.xlu1 %716 }
 0x19f   :  { %724 = vst.msk [vmem:[#allocation25 + $0x4] sm:$0xf] %vm722_vm2, %v713_v5 }
 0x1a0   :  { %786 = vst.msk [vmem:[#allocation26 + $0x4] sm:$0xf] %vm697_vm1, %v782_v21 }
 0x1a1   :  { %726 = vst.msk [vmem:[#allocation25 + $0xc] sm:$0xf] %vm722_vm2, %v717_v27 }
 0x1a2   :  { %v598_v25 = vpop.f32.mrf.mxu2 }
 0x1a3   :  { %v599_v12 = vadd.f32 %v993_v6, %v598_v25 }
 0x1a5   :  { %v783_v8 = vpack.c.bf16 %v599_v12, %v599_v12 }
 0x1a7   :  { %787 = vst.msk [vmem:[#allocation26 + $0x8] sm:$0xf] %vm697_vm1, %v783_v8 }
 0x1aa   :  { %v600_v29 = vpop.f32.mrf.mxu2 }
 0x1ab   :  { %v601_v30 = vadd.f32 %v993_v6, %v600_v29 }
 0x1ad   :  { %v784_v7 = vpack.c.bf16 %v601_v30, %v601_v30 }
 0x1af   :  { %788 = vst.msk [vmem:[#allocation26 + $0xc] sm:$0xf] %vm697_vm1, %v784_v7 }
 0x1b0   :  { %818 = dma.vmem_to_hbm [thread:$0]  %s811_s8, 256, %s813_s11, [#allocation27], %s1801_s2, %s1801_s2, %s1427_s4  }
 0x1b1   :  { %831 = dma.vmem_to_hbm [thread:$0]  %s824_s10, 512, %s826_s3, [#allocation27], %s1799_s25, %s1799_s25, %s1424_s1  }
 0x204   :  { %v638_v43 = vpop.f32.mrf.mxu3 }
 0x205   :  { %v639_v44 = vadd.f32 %v991_v42, %v638_v43 }
 0x207   :  { %v727_v45 = vpack.c.bf16 %v639_v44, %v639_v44 }
 0x209   :  { %735 = vrot.lane.b32.xlu2 %v727_v45, %s1801_s2 }
 0x20c   :  { %v640_v49 = vpop.f32.mrf.mxu3 }
 0x20d   :  { %v641_v50 = vadd.f32 %v991_v42, %v640_v49 }
 0x20f   :  { %v728_v52 = vpack.c.bf16 %v641_v50, %v641_v50 }
 0x211   :  { %737 = vrot.lane.b32.xlu2 %v728_v52, %s1801_s2 }
 0x214   :  { %v643_v54 = vpop.f32.mrf.mxu3 }
 0x215   :  { %v644_v55 = vadd.f32 %v991_v42, %v643_v54 }
 0x217   :  { %v729_v57 = vpack.c.bf16 %v644_v55, %v644_v55 }
 0x219   :  { %739 = vrot.lane.b32.xlu0 %v729_v57, %s1801_s2  ;;  %770 = vrot.lane.b32.xlu2 %v759_v56, %s1440_s26 }
 0x21c   :  { %v645_v59 = vpop.f32.mrf.mxu3 }
 0x21d   :  { %v646_v60 = vadd.f32 %v991_v42, %v645_v59 }
 0x21f   :  { %v730_v62 = vpack.c.bf16 %v646_v60, %v646_v60 }
 0x221   :  { %741 = vrot.lane.b32.xlu1 %v730_v62, %s1801_s2  ;;  %766 = vrot.lane.b32.xlu0 %v757_v61, %s1440_s26 }
 0x229   :  { %768 = vrot.lane.b32.xlu1 %v758_v1, %s1440_s26 }
 0x263   :  { %v736_v26 = vpop.permute.xlu2 %735 }
 0x264   :  { %748 = vst.msk [vmem:[#allocation25] sm:$0xf] %vm747_vm3, %v736_v26 }
 0x265   :  { %777 = vst.msk [vmem:[#allocation25] sm:$0xf] %vm776_vm4, %v765_v23 }
 0x26b   :  { %v738_v28 = vpop.permute.xlu2 %737 }
 0x26c   :  { %749 = vst.msk [vmem:[#allocation25 + $0x4] sm:$0xf] %vm747_vm3, %v738_v28 }
 0x273   :  { %v771_v31 = vpop.permute.xlu2 %770 }
 0x28b   :  { %v740_v15 = vpop.permute.xlu0 %739 }
 0x28c   :  { %750 = vst.msk [vmem:[#allocation25 + $0x8] sm:$0xf] %vm747_vm3, %v740_v15 }
 0x293   :  { %v742_v32 = vpop.permute.xlu1 %741  ;;  %v767_v33 = vpop.permute.xlu0 %766 }
 0x294   :  { %751 = vst.msk [vmem:[#allocation25 + $0xc] sm:$0xf] %vm747_vm3, %v742_v32 }
 0x295   :  { %778 = vst.msk [vmem:[#allocation25 + $0x4] sm:$0xf] %vm776_vm4, %v767_v33 }
 0x296   :  { %780 = vst.msk [vmem:[#allocation25 + $0xc] sm:$0xf] %vm776_vm4, %v771_v31 }
 0x29b   :  { %v769_v34 = vpop.permute.xlu1 %768 }
 0x29c   :  { %779 = vst.msk [vmem:[#allocation25 + $0x8] sm:$0xf] %vm776_vm4, %v769_v34 }
 0x29d   :  { %805 = dma.vmem_to_hbm [thread:$0]  %s798_s22, 256, %s800_s9, [#allocation4], %s1801_s2, %s1801_s2, %s1427_s4  }
 0x29e   :  { %1418 = dma.done.wait [#allocation4], 256  }
 0x29f   :  { %1419 = vsyncadd [#allocation4], 4294967040 }
 0x2a0   :  { %1420 = dma.done.wait [#allocation27], 768  }
 0x2a1   :  { %1421 = vsyncadd [#allocation27], 4294966528 }
 0x2a2   :  { %844 = vsyncpa [#allocation3], 1 }
 0x2a3   :  { %845 = vsyncpa [#allocation6], 1 }
 0x2a4   :  { %846 = vsyncpa [#allocation9], 1 }
 0x2a5   :  { %847 = vsyncpa [#allocation12], 1 }
 0x2a6   :  { %848 = vsyncpa [#allocation15], 1 }
 0x2a7   :  { %849 = vsyncpa [#allocation18], 1 }
 0x2a8   :  { %850 = vsyncpa [#allocation21], 1 }
 0x2a9   :  { %851 = vsyncpa [#allocation24], 1 }
 0x2aa   :  { %852 = vsyncpa [#allocation4], 1 }
 0x2ab   :  { %853 = vsyncpa [#allocation27], 1 }

</bundles_post_ra>
